<compile_context>
chip_gen: v6e
topology: v6e:2x2x1
jax: 0.10.0
libtpu: 0.0.40
codegen_flags: <defaults>
</compile_context>

<pallas_src>
import functools

import jax
import jax.numpy as jnp
import numpy as np
from jax.experimental import pallas as pl
from jax.experimental.pallas import tpu as pltpu


def _round_up(v: int, m: int) -> int:
    return (v + m - 1) // m * m


def _choose_tiling(n: int, cap: int = 1024):
    """Pick tile (== tile_n == tile_k) and padded N.

    Preference order: minimal quadratic padding of the dense adjacency, then >= 2 row
    tiles (so the "parallel" axis feeds both v7x TensorCores), then the largest tile
    (amortises per-grid-step overhead).
    """
    n128 = _round_up(max(n, 1), 128)
    cap = max(128, min(cap, n128))
    best_key, best = None, None
    for tile in range(128, cap + 1, 128):
        n_pad = _round_up(n128, tile)
        key = (n_pad, 0 if n_pad // tile >= 2 else 1, -tile)
        if best_key is None or key < best_key:
            best_key, best = key, (tile, n_pad)
    return best


def _reaction_head_kernel(kblk_ref, kcnt_ref,                 # scalar prefetch (SMEM)
                          adj_ref, xw_ref, b_ref, mask_ref,   # inputs (VMEM)
                          out_ref,                            # output
                          agg_ref,                            # scratch
                          *, max_kblk: int, tile: int):
    """One (row-tile i, schedule-slot k) grid step.

    kblk_ref : [n_row_tiles*max_kblk] i32  flat per-row-tile list of occupied k blocks
    kcnt_ref : [n_row_tiles]          i32  number of valid schedule entries per row tile
    adj_ref  : [tile, tile]   bf16   (A + I) block at block index (i, kblk[i, k])
    xw_ref   : [n_pad, Dp]    bf16   x @ W, fully resident (constant index_map)
    b_ref    : [1, Dp]        f32    GNN bias
    mask_ref : [2Bp, tile]    bf16   segment-mask columns for this row tile
    out_ref  : [1, 2Bp, Dp]   f32    pooled partial sums for this row tile
    agg_ref  : [tile, Dp]     f32    accumulator for (A + I) @ (x @ W) over the schedule
    """
    i = pl.program_id(0)
    k = pl.program_id(1)

    @pl.when(k == 0)
    def _():
        agg_ref[...] = jnp.zeros_like(agg_ref)

    # Skip schedule padding slots (their adj block just repeats the previous one).
    @pl.when(k < kcnt_ref[i])
    def _():
        kb = kblk_ref[i * max_kblk + k]
        start = pl.multiple_of(kb * tile, tile)
        xw_tile = xw_ref[pl.ds(start, tile), :]               # slice resident xw
        agg_ref[...] += jnp.dot(adj_ref[...], xw_tile,
                                preferred_element_type=jnp.float32)

    @pl.when(k == pl.num_programs(1) - 1)
    def _():
        node_rep = jnp.maximum(agg_ref[...] + b_ref[...], 0.0).astype(jnp.bfloat16)
        # Masked segment pooling as a matmul: [2Bp, tile] @ [tile, Dp] -> [2Bp, Dp].
        out_ref[0, :, :] = jnp.dot(mask_ref[...], node_rep,
                                   preferred_element_type=jnp.float32)


def reaction_classification_head(x, edge_index, batch_assign, mol_idx, y, w, b,
                                 *, batch_size: int, pool: str = "sum",
                                 tile_cap: int = 1024):
    """Pallas implementation of ReactionClassificationHead.forward.

    x:            [N, F] f32 node features
    edge_index:   [2, E] i32 COO edges
    batch_assign: [N] i32 graph id per node
    mol_idx:      [N] i32 (0 = reactant node, 1 = product node)
    y:            [B] labels (passed through, like the torch module)
    w, b:         GNN projection params, [F, D] and [1, D]
    returns (readout [B, 2*D] f32, y)
    """
    n, f = x.shape
    d = w.shape[1]
    d_pad = _round_up(max(d, 128), 128)
    tile, n_pad = _choose_tiling(n, tile_cap)
    n_row_tiles = n_pad // tile
    n_k_tiles = n_pad // tile
    two_b = 2 * batch_size
    two_b_pad = _round_up(max(two_b, 16), 16)   # bf16 packs 16 rows per sublane group

    # ---- host-side block-sparse schedule: which k blocks of (A+I) are non-empty per
    # ---- row tile.  Needs concrete edge_index (max_kblk is a static grid extent). ----
    src_np = np.asarray(edge_index[0], dtype=np.int64)
    dst_np = np.asarray(edge_index[1], dtype=np.int64)
    self_np = np.arange(n, dtype=np.int64)
    all_src = np.concatenate([src_np, self_np])
    all_dst = np.concatenate([dst_np, self_np])
    occ = np.zeros((n_row_tiles, n_k_tiles), dtype=bool)
    occ[all_src // tile, all_dst // tile] = True
    kcount_np = occ.sum(axis=1).astype(np.int32)
    max_kblk = max(1, int(kcount_np.max()))
    kblocks_np = np.zeros((n_row_tiles, max_kblk), dtype=np.int32)
    for i in range(n_row_tiles):
        ids = np.nonzero(occ[i])[0].astype(np.int32)
        if ids.size:
            kblocks_np[i, :ids.size] = ids
            kblocks_np[i, ids.size:] = ids[-1]   # repeat last -> Pallas skips the re-DMA
    kblocks = jnp.asarray(kblocks_np.reshape(-1))  # flat 1-D (friendly SMEM layout)
    kcount = jnp.asarray(kcount_np)

    # ---- glue (plain JAX) -----------------------------------------------------------
    # Precompute xw = x @ W once (tiny), pad to lane-dense [n_pad, d_pad], cast bf16.
    xw = jnp.dot(x.astype(jnp.float32), w.astype(jnp.float32),
                 precision=jax.lax.Precision.HIGHEST)
    xw_bf = jnp.zeros((n_pad, d_pad), jnp.bfloat16).at[:n, :d].set(
        xw.astype(jnp.bfloat16))
    bp = jnp.zeros((1, d_pad), jnp.float32).at[:, :d].set(
        b.astype(jnp.float32).reshape(1, d))

    # Dense (A + I) built directly in bf16 with a single scatter (self-loop pairs are
    # appended to edge_index; small-integer entries are exact in bf16).
    src = jnp.concatenate([edge_index[0].astype(jnp.int32),
                           jnp.arange(n, dtype=jnp.int32)])
    dst = jnp.concatenate([edge_index[1].astype(jnp.int32),
                           jnp.arange(n, dtype=jnp.int32)])
    adj_bf = jnp.zeros((n_pad, n_pad), jnp.bfloat16).at[src, dst].add(
        jnp.ones((src.shape[0],), jnp.bfloat16))

    # Precomputed segment mask (row 2b: graph b reactants, row 2b+1: graph b products).
    batch_pad = jnp.full((n_pad,), -1, jnp.int32).at[:n].set(
        batch_assign.astype(jnp.int32))
    mol_pad = jnp.zeros((n_pad,), jnp.int32).at[:n].set(mol_idx.astype(jnp.int32))
    seg = jnp.where(batch_pad >= 0, 2 * batch_pad + mol_pad, -1)
    mask = (seg[None, :] == jnp.arange(two_b_pad)[:, None]).astype(jnp.float32)
    mask_bf = mask.astype(jnp.bfloat16)

    occupied = int(kcount_np.sum())
    flops = int(2 * occupied * tile * tile * d_pad
                + 2 * n_row_tiles * two_b_pad * tile * d_pad)
    bytes_accessed = int(occupied * tile * tile * 2     # only non-empty adj blocks
                         + n_pad * d_pad * 2            # xw, resident (DMA'd once)
                         + two_b_pad * n_pad * 2 + d_pad * 4
                         + n_row_tiles * two_b_pad * d_pad * 4)

    vmem_need = (2 * tile * tile * 2          # adj double-buffer (bf16)
                 + 2 * n_pad * d_pad * 2      # resident xw (bf16)
                 + 2 * two_b_pad * tile * 2   # mask block
                 + 2 * two_b_pad * d_pad * 4  # out block
                 + tile * d_pad * 4           # agg scratch
                 + 2 * d_pad * 4)             # bias
    vmem_limit = int(max(32 * 1024 * 1024, min(vmem_need + (8 << 20), 100 << 20)))

    kernel = functools.partial(_reaction_head_kernel, max_kblk=max_kblk, tile=tile)

    out_partial = pl.pallas_call(
        kernel,
        out_shape=jax.ShapeDtypeStruct((n_row_tiles, two_b_pad, d_pad), jnp.float32),
        grid_spec=pltpu.PrefetchScalarGridSpec(
            num_scalar_prefetch=2,
            grid=(n_row_tiles, max_kblk),
            in_specs=[
                # adjacency block at (i, kblocks[i, k]) — only non-empty blocks appear.
                pl.BlockSpec((tile, tile),
                             lambda i, k, kb, kc: (i, kb[i * max_kblk + k])),
                # xw fully resident: constant block index -> DMA'd once, sliced in-kernel.
                pl.BlockSpec((n_pad, d_pad), lambda i, k, kb, kc: (0, 0)),
                pl.BlockSpec((1, d_pad), lambda i, k, kb, kc: (0, 0)),
                pl.BlockSpec((two_b_pad, tile), lambda i, k, kb, kc: (0, i)),
            ],
            out_specs=pl.BlockSpec((1, two_b_pad, d_pad),
                                   lambda i, k, kb, kc: (i, 0, 0)),
            scratch_shapes=[pltpu.VMEM((tile, d_pad), jnp.float32)],
        ),
        compiler_params=pltpu.CompilerParams(
            dimension_semantics=("parallel", "arbitrary"),
            vmem_limit_bytes=vmem_limit,
        ),
        cost_estimate=pl.CostEstimate(flops=flops, transcendentals=0,
                                      bytes_accessed=bytes_accessed),
    )(kblocks, kcount, adj_bf, xw_bf, bp, mask_bf)

    # Sum the per-row-tile partial pools (tiny), strip padding.
    pooled = jnp.sum(out_partial, axis=0)[:two_b, :d]                  # [2B, D]
    if pool == "mean":
        counts = jnp.sum(mask[:two_b, :], axis=1, keepdims=True)
        pooled = pooled / jnp.maximum(counts, 1.0)  # NOTE: torch mean of empty -> NaN

    readout = pooled.reshape(batch_size, 2 * d)   # per row: [reactant_pool | product_pool]
    return readout, y


def _reference(x, adj_with_self, w, b, batch_assign, mol_idx, batch_size, pool):
    """Numpy reference mirroring the kernel's bf16 casts (f32 accumulation)."""
    def bf(a):
        return np.asarray(jnp.asarray(np.asarray(a), jnp.bfloat16).astype(jnp.float32))

    xw = bf(np.asarray(x, np.float32) @ np.asarray(w, np.float32))
    agg = bf(adj_with_self) @ xw                       # (A + I) @ (x @ W), f32 acc
    node_rep = bf(np.maximum(agg + np.asarray(b, np.float32), 0.0))

    batch_assign = np.asarray(batch_assign)
    mol_idx = np.asarray(mol_idx)
    rows = []
    for bi in range(batch_size):
        sel = batch_assign == bi
        rep_b = node_rep[sel]
        mol_b = mol_idx[sel]
        reac = rep_b[mol_b == 0]
        prod = rep_b[mol_b == 1]
        if pool == "sum":
            rp, pp = reac.sum(0), prod.sum(0)
        else:
            rp, pp = reac.mean(0), prod.mean(0)
        rows.append(np.concatenate([rp, pp]))
    return np.stack(rows)


if __name__ == "__main__":
    key = jax.random.PRNGKey(0)
    k_x, k_w, k_b, k_y = jax.random.split(key, 4)

    # Small synthetic reaction batch: B=2 graphs, each with 40 reactant + 40 product nodes.
    B = 2
    nodes_per_mol = 40
    N = B * 2 * nodes_per_mol          # 160 nodes -> tile 128, padded 256, 2 row tiles
    F = 16                             # input node-feature dim
    D = 32                             # GNN hidden / output dim

    x = jax.random.normal(k_x, (N, F), dtype=jnp.float32)
    w = jax.random.normal(k_w, (F, D), dtype=jnp.float32) * 0.1
    b = jax.random.normal(k_b, (1, D), dtype=jnp.float32) * 0.1
    y = jax.random.randint(k_y, (B,), 0, 4, dtype=jnp.int32)

    # Graph assignment / mol_idx per node, plus bidirectional chain edges per molecule.
    batch_assign = np.repeat(np.arange(B), 2 * nodes_per_mol).astype(np.int32)
    mol_idx = np.tile(np.repeat(np.array([0, 1]), nodes_per_mol), B).astype(np.int32)

    src, dst = [], []
    for mol_start in range(0, N, nodes_per_mol):
        for i in range(nodes_per_mol - 1):
            a, c = mol_start + i, mol_start + i + 1
            src += [a, c]
            dst += [c, a]
    edge_index = jnp.asarray(np.stack([src, dst]), dtype=jnp.int32)

    readout, labels = reaction_classification_head(
        x, edge_index, jnp.asarray(batch_assign), jnp.asarray(mol_idx), y, w, b,
        batch_size=B, pool="sum", tile_cap=1024)
    readout = jax.block_until_ready(readout)

    # Correctness check against a numpy reference of the torch semantics
    # (reference mirrors the kernel's bf16 input/intermediate casts).
    adj_np = np.zeros((N, N), np.float32)
    np.add.at(adj_np, (np.asarray(src), np.asarray(dst)), 1.0)
    adj_np[np.arange(N), np.arange(N)] += 1.0        # self loop == the "+ x" term
    ref = _reference(x, adj_np, w, b, batch_assign, mol_idx, B, "sum")
    np.testing.assert_allclose(np.asarray(readout), ref, rtol=2e-2, atol=2e-2)
    assert readout.shape == (B, 2 * D)
    assert labels.shape == (B,)

    print("KERNEL_OK")
</pallas_src>

<mosaic_0001>
module attributes {stable_mosaic.version = 11 : i64} {
  func.func @_reaction_head_kernel(%arg0: i32, %arg1: i32, %arg2: memref<4xi32, #tpu.memory_space<smem>>, %arg3: memref<2xi32, #tpu.memory_space<smem>>, %arg4: memref<128x128xbf16, #tpu.memory_space<vmem>>, %arg5: memref<256x128xbf16, #tpu.memory_space<vmem>>, %arg6: memref<1x128xf32, #tpu.memory_space<vmem>>, %arg7: memref<16x128xbf16, #tpu.memory_space<vmem>>, %arg8: memref<1x16x128xf32, #tpu.memory_space<vmem>>, %arg9: memref<128x128xf32, #tpu.memory_space<vmem>>) attributes {dimension_semantics = [#tpu.dimension_semantics<parallel>, #tpu.dimension_semantics<arbitrary>], iteration_bounds = array<i64: 2, 2>, scalar_prefetch = 2 : i64, scratch_operands = 1 : i64, tpu.core_type = #tpu.core_type<tc>, window_params = [{transform_indices = @transform_0, window_bounds = array<i64: 128, 128>}, {pipeline_mode = #tpu.pipeline_mode<synchronous>, transform_indices = @transform_1, window_bounds = array<i64: 256, 128>}, {pipeline_mode = #tpu.pipeline_mode<synchronous>, transform_indices = @transform_2, window_bounds = array<i64: 1, 128>}, {transform_indices = @transform_3, window_bounds = array<i64: 16, 128>}, {transform_indices = @transform_4, window_bounds = array<i64: 1, 16, 128>}]} {
    %c0_i32 = arith.constant 0 : i32
    %0 = arith.cmpi eq, %arg1, %c0_i32 : i32
    %1 = arith.extui %0 : i1 to i32
    %c0_i32_0 = arith.constant 0 : i32
    %2 = arith.cmpi ne, %1, %c0_i32_0 : i32
    scf.if %2 {
      %cst = arith.constant 0.000000e+00 : f32
      %11 = vector.broadcast %cst : f32 to vector<128x128xf32>
      %c0 = arith.constant 0 : index
      %c0_3 = arith.constant 0 : index
      %12 = vector.load %arg9[%c0, %c0_3] : memref<128x128xf32, #tpu.memory_space<vmem>>, vector<128x128xf32>
      tpu.vector_store %arg9[%c0, %c0_3], %11 {strides = array<i32>} : memref<128x128xf32, #tpu.memory_space<vmem>>, vector<128x128xf32>,
    } else {
    }
    %3 = arith.index_cast %arg0 : i32 to index
    %4 = memref.load %arg3[%3] : memref<2xi32, #tpu.memory_space<smem>>
    %5 = arith.cmpi slt, %arg1, %4 : i32
    %6 = arith.extui %5 : i1 to i32
    %c0_i32_1 = arith.constant 0 : i32
    %7 = arith.cmpi ne, %6, %c0_i32_1 : i32
    scf.if %7 {
      %c2_i32 = arith.constant 2 : i32
      %11 = arith.muli %arg0, %c2_i32 : i32
      %12 = arith.addi %11, %arg1 : i32
      %13 = arith.index_cast %12 : i32 to index
      %14 = memref.load %arg2[%13] : memref<4xi32, #tpu.memory_space<smem>>
      %c128_i32 = arith.constant 128 : i32
      %15 = arith.muli %14, %c128_i32 : i32
      %16 = tpu.assume_multiple %15, 128 : i32
      %17 = arith.index_cast %16 : i32 to index
      %c0 = arith.constant 0 : index
      %18 = vector.load %arg5[%17, %c0] : memref<256x128xbf16, #tpu.memory_space<vmem>>, vector<128x128xbf16>
      %c0_3 = arith.constant 0 : index
      %c0_4 = arith.constant 0 : index
      %19 = vector.load %arg9[%c0_3, %c0_4] : memref<128x128xf32, #tpu.memory_space<vmem>>, vector<128x128xf32>
      %c0_5 = arith.constant 0 : index
      %c0_6 = arith.constant 0 : index
      %20 = vector.load %arg4[%c0_5, %c0_6] : memref<128x128xbf16, #tpu.memory_space<vmem>>, vector<128x128xbf16>
      %cst = arith.constant dense<0.000000e+00> : vector<128x128xf32>
      %21 = tpu.matmul %20, %18, %cst {dimension_numbers = #tpu.dot_dimension_numbers<[1], [0], [0], [1], [0, 0, 1, 1], [], []>} : vector<128x128xbf16>, vector<128x128xbf16>, vector<128x128xf32> -> vector<128x128xf32>
      %22 = arith.addf %19, %21 : vector<128x128xf32>
      %c0_7 = arith.constant 0 : index
      %c0_8 = arith.constant 0 : index
      %23 = vector.load %arg9[%c0_7, %c0_8] : memref<128x128xf32, #tpu.memory_space<vmem>>, vector<128x128xf32>
      tpu.vector_store %arg9[%c0_7, %c0_8], %22 {strides = array<i32>} : memref<128x128xf32, #tpu.memory_space<vmem>>, vector<128x128xf32>,
    } else {
    }
    %c1_i32 = arith.constant 1 : i32
    %8 = arith.cmpi eq, %arg1, %c1_i32 : i32
    %9 = arith.extui %8 : i1 to i32
    %c0_i32_2 = arith.constant 0 : i32
    %10 = arith.cmpi ne, %9, %c0_i32_2 : i32
    scf.if %10 {
      %c0 = arith.constant 0 : index
      %c0_3 = arith.constant 0 : index
      %11 = vector.load %arg9[%c0, %c0_3] : memref<128x128xf32, #tpu.memory_space<vmem>>, vector<128x128xf32>
      %c0_4 = arith.constant 0 : index
      %c0_5 = arith.constant 0 : index
      %12 = vector.load %arg6[%c0_4, %c0_5] : memref<1x128xf32, #tpu.memory_space<vmem>>, vector<1x128xf32>
      %13 = vector.broadcast %12 : vector<1x128xf32> to vector<128x128xf32>
      %14 = arith.addf %11, %13 : vector<128x128xf32>
      %cst = arith.constant 0.000000e+00 : f32
      %15 = vector.broadcast %cst : f32 to vector<128x128xf32>
      %16 = arith.maximumf %14, %15 : vector<128x128xf32>
      %17 = arith.truncf %16 : vector<128x128xf32> to vector<128x128xbf16>
      %c0_6 = arith.constant 0 : index
      %c0_7 = arith.constant 0 : index
      %18 = vector.load %arg7[%c0_6, %c0_7] : memref<16x128xbf16, #tpu.memory_space<vmem>>, vector<16x128xbf16>
      %cst_8 = arith.constant dense<0.000000e+00> : vector<16x128xf32>
      %19 = tpu.matmul %18, %17, %cst_8 {dimension_numbers = #tpu.dot_dimension_numbers<[1], [0], [0], [1], [0, 0, 1, 1], [], []>} : vector<16x128xbf16>, vector<128x128xbf16>, vector<16x128xf32> -> vector<16x128xf32>
      %c0_9 = arith.constant 0 : index
      %c0_10 = arith.constant 0 : index
      %c0_11 = arith.constant 0 : index
      %20 = vector.load %arg8[%c0_9, %c0_10, %c0_11] : memref<1x16x128xf32, #tpu.memory_space<vmem>>, vector<1x16x128xf32>
      %21 = vector.shape_cast %20 : vector<1x16x128xf32> to vector<16x128xf32>
      %22 = vector.shape_cast %19 : vector<16x128xf32> to vector<1x16x128xf32>
      tpu.vector_store %arg8[%c0_9, %c0_10, %c0_11], %22 {strides = array<i32>} : memref<1x16x128xf32, #tpu.memory_space<vmem>>, vector<1x16x128xf32>,
    } else {
    }
    return
  }
  func.func @transform_0(%arg0: i32, %arg1: i32, %arg2: memref<4xi32, #tpu.memory_space<smem>>, %arg3: memref<2xi32, #tpu.memory_space<smem>>) -> (i32, i32) {
    %c2_i32 = arith.constant 2 : i32
    %0 = arith.muli %arg0, %c2_i32 : i32
    %1 = arith.addi %0, %arg1 : i32
    %2 = arith.index_cast %1 : i32 to index
    %3 = memref.load %arg2[%2] : memref<4xi32, #tpu.memory_space<smem>>
    %c0_i32 = arith.constant 0 : i32
    return %arg0, %3 : i32, i32
  }
  func.func @transform_1(%arg0: i32, %arg1: i32, %arg2: memref<4xi32, #tpu.memory_space<smem>>, %arg3: memref<2xi32, #tpu.memory_space<smem>>) -> (i32, i32) {
    %c0_i32 = arith.constant 0 : i32
    %c0_i32_0 = arith.constant 0 : i32
    %c0_i32_1 = arith.constant 0 : i32
    return %c0_i32, %c0_i32_0 : i32, i32
  }
  func.func @transform_2(%arg0: i32, %arg1: i32, %arg2: memref<4xi32, #tpu.memory_space<smem>>, %arg3: memref<2xi32, #tpu.memory_space<smem>>) -> (i32, i32) {
    %c0_i32 = arith.constant 0 : i32
    %c0_i32_0 = arith.constant 0 : i32
    %c0_i32_1 = arith.constant 0 : i32
    return %c0_i32, %c0_i32_0 : i32, i32
  }
  func.func @transform_3(%arg0: i32, %arg1: i32, %arg2: memref<4xi32, #tpu.memory_space<smem>>, %arg3: memref<2xi32, #tpu.memory_space<smem>>) -> (i32, i32) {
    %c0_i32 = arith.constant 0 : i32
    %c0_i32_0 = arith.constant 0 : i32
    return %c0_i32, %arg0 : i32, i32
  }
  func.func @transform_4(%arg0: i32, %arg1: i32, %arg2: memref<4xi32, #tpu.memory_space<smem>>, %arg3: memref<2xi32, #tpu.memory_space<smem>>) -> (i32, i32, i32) {
    %c0_i32 = arith.constant 0 : i32
    %c0_i32_0 = arith.constant 0 : i32
    %c0_i32_1 = arith.constant 0 : i32
    return %arg0, %c0_i32, %c0_i32_0 : i32, i32, i32
  }
}

</mosaic_0001>

<bundles_post_ra>
// kernel: tpu_custom_call.1
= control target key start
LH: loop header
LB: loop body
LE: loop exit
PB: predicated region body
PF: predicated region fallthrough
CT: control target
= control target key end

     0   :  { %s1389_s21 = smov [#allocation4]   ;;  %s1824_s0 = inlined_call_operand.hbm [shape: s32[4], index: 0, kind: input, shape index: {}]   ;;  %s1825_s2 = inlined_call_operand.hbm [shape: bf16[256,256], index: 2, kind: input, shape index: {}]   ;;  %s1826_s3 = inlined_call_operand.hbm [shape: bf16[256,128], index: 3, kind: input, shape index: {}]   ;;  %s1827_s4 = inlined_call_operand.vmem [shape: f32[1,128], index: 4, kind: input, shape index: {}]   ;;  %s1828_s5 = inlined_call_operand.hbm [shape: bf16[16,256], index: 5, kind: input, shape index: {}]   ;;  %s1829_s6 = inlined_call_operand.hbm [shape: f32[2,16,128], index: 6, kind: output, shape index: {}]   ;;  %s1830_s1 = inlined_call_operand.vmem [shape: s32[2], index: 1, kind: input, shape index: {}]  }
   0x1   :  { %1845 = sst [smem:[#allocation29_spill]] %s1825_s2  ;;  %s13_s26 = sshll.u32 %s1830_s1, 4  ;;  %s14_s26 = int_to_ptr.vmem [resolvable:$true] %s13_s26 }
   0x2   :  { %1846 = sst [smem:[#allocation30_spill]] %s1827_s4  ;;  %s1163_s27 = scalar_lea.vmem %s14_s26, 16 }
   0x3   :  { %1847 = sst [smem:[#allocation31_spill]] %s1829_s6  ;;  %p1164_p0 = scmp.ne.s32.totalorder %s14_s26, %s1163_s27 }
   0x4   :  { %12 = dma.hbm_to_smem %s1824_s0, 16, %s1389_s21, [#allocation3] }
   0x5   :  { %p1168_p1 = scmp.lt.s32.totalorder %s14_s26, %s14_s26  ;;  %p1169_p2 = scmp.lt.s32.totalorder %s1163_s27, %s1163_s27 }
   0x7   :  { %p1170_p3 = por %p1169_p2, %p1168_p1 }
   0x9   :  { %p1171_p4 = pnand %p1170_p3, %p1164_p0 }
   0xb   :  { %1174 = shalt.err (!%p1171_p4)  }
   0xc   :  { %s1390_s28 = smov [#allocation5]  }
   0xd   :  { %16 = dma.vmem_to_smem %s14_s26, 16, %s1390_s28, [#allocation3] }
   0xe   :  { %1327 = dma.done.wait [#allocation3], 32 }
   0xf   :  { %1328 = vsyncadd [#allocation3], 4294967264 }
  0x10   :  { %18 = sfence }
  0x11   :  { %19 = vsyncpa [#allocation7], 0 }
  0x12   :  { %21 = vsyncpa [#allocation7 + $0x1], 0 }
  0x13   :  { %22 = vsyncpa [#allocation10], 0 }
  0x14   :  { %23 = vsyncpa [#allocation8], 0 }
  0x15   :  { %25 = vsyncpa [#allocation8 + $0x1], 0  ;;  %s1444_s0 = smov 0   ;;  %s1446_s1 = smov 0  }
  0x16   :  { %s1448_s29 = smov 0   ;;  %s1450_s30 = smov 0  }
  0x17   :  { %s1452_s7 = smov 0   ;;  %s1454_s8 = smov 0  }
  0x18   :  { %s1456_s9 = smov 0   ;;  %s1458_s10 = smov 0  }
  0x19   :  { %s1460_s11 = smov 0   ;;  %s1462_s12 = smov 0  }
  0x1a   :  { %s1464_s13 = smov 0  }
  0x1b LB: > { %1848 = sst [smem:[#allocation20_spill]] %s1355_s29  ;;  %s40_s14 = sadd.s32 1, %s1379_s11  ;;  %s1387_s13 = sphi %s1464_s13, %s31_s13   ;;  %s1383_s12 = sphi %s1462_s12, %s1889_s12   ;;  %s1379_s11 = sphi %s1460_s11, %s1888_s11   ;;  %s1375_s10 = sphi %s1458_s10, %s1887_s10   ;;  %s1371_s9 = sphi %s1456_s9, %s1894_s9   ;;  %s1367_s8 = sphi %s1454_s8, %s1885_s8   ;;  %s1363_s7 = sphi %s1452_s7, %s1893_s7   ;;  %s1359_s30 = sphi %s1450_s30, %s1892_s30   ;;  %s1355_s29 = sphi %s1448_s29, %s1883_s29   ;;  %s1351_s1 = sphi %s1446_s1, %s1891_s1   ;;  %s1347_s0 = sphi %s1444_s0, %s1890_s0  }
  0x1c   : > { %1849 = sst [smem:[#allocation21_spill]] %s1367_s8  ;;  %s43_s15 = sadd.s32 1, %s1383_s12 }
  0x1d   : > { %1850 = sst [smem:[#allocation22_spill]] %s1379_s11  ;;  %p41_p5 = scmp.ge.s32.totalorder %s40_s14, 2 }
  0x1e   : > { %1851 = sst [smem:[#allocation23_spill]] %s1383_s12  ;;  %s865_s16 = sshll.u32 %s1383_s12, 1 }
  0x1f   : > { %s1503_s17 = sadd.s32 %s1379_s11, %s865_s16  ;;  %s1896_s14 = smov (%p41_p5, %s40_s14), 0 }
  0x20   : > { %1852 = sst [smem:[#allocation24_spill]] %s1896_s14  ;;  %s1898_s15 = smov (!%p41_p5, %s43_s15), %s1383_s12 }
  0x21   : > { %s49_s19 = sld [smem:[#allocation4 + %s1503_s17]]  ;;  %p65_p6 = scmp.ne.s32.totalorder %s1367_s8, %s1363_s7 }
  0x22   : > { %p45_p7 = scmp.ge.s32.totalorder %s1898_s15, 2  ;;  %p1836_p8 = scmp.eq.s32.totalorder %s1387_s13, 0 }
  0x23   : > { %p1835_p11 = scmp.lt.s32.totalorder %s1387_s13, 4  ;;  %s205_s25 = sand.u32 1, %s1387_s13  }
  0x24   : > { %s1900_s15 = smov (%p45_p7, %s1898_s15), 0  ;;  %p1517_p9 = por %p1836_p8, %p65_p6 }
  0x25   : > { %1853 = sst [smem:[#allocation25_spill]] %s1900_s15  ;;  %s866_s21 = sshll.u32 %s1900_s15, 1 }
  0x26   : > { %s1524_s22 = ssub.s32 %s1383_s12, %s1900_s15  ;;  %s51_s23 = sadd.s32 %s866_s21, %s1896_s14 }
  0x27   : > { %s52_s24 = sld [smem:[#allocation4 + %s51_s23]]  ;;  %s207_s26 = sand.u32 1, %s1367_s8  }
  0x28   : > { %s870_s27 = sshll.u32 %s207_s26, 6  ;;  %s911_s28 = sshll.u32 %s1383_s12, 5 }
  0x29   : > { %s1008_s16 = scalar_select %p1517_p9, [#allocation4], [#allocation13] }
  0x2a   : > { %s1902_s17 = smov (!%p1517_p9, %s1503_s17), 0  ;;  %s209_s18 = scalar_lea.vmem [#allocation6], %s870_s27 }
  0x2b   : > { %s221_s15 = sshll.u32 %s209_s18, 4  ;;  %p1544_p13 = pnand %p1835_p11, %p1517_p9  ;;  %s1538_s15 = int_to_ptr.vmem [resolvable:$true] %s221_s15 }
  0x2c   : > { %s1904_s16 = smov (!%p1835_p11, %s1008_s16), [#allocation14]  ;;  %s1856_s26 = sadd.s32 1, %s1367_s8 }
  0x2d   : > { %s54_s21 = ssub.s32 %s49_s19, %s52_s24  ;;  %s1906_s17 = smov (!%p1835_p11, %s1902_s17), 0 }
  0x2e   : > { %s55_s14 = sor.u32 %s54_s21, %s1524_s22  ;;  %s212_s19 = sld [smem:[%s1904_s16 + %s1906_s17]] }
  0x2f   : > { %p56_p12 = scmp.eq.s32.totalorder %s55_s14, 0  ;;  %s1558_s27 = sadd.s32 4294967295, %s1387_s13  }
  0x30   : > { %s1858_s2 = sld [smem:[#allocation29_spill]]  ;;  %s864_s6 = sadd.s32 4294967294, %s1387_s13  }
  0x31   : > { %s1553_s11 = scalar_select %p56_p12, %s1367_s8, %s1856_s26  }
  0x32   : > { %s1566_s4 = scalar_lea.sflag [#allocation7], %s205_s25  ;;  %p1177_p1 = pneg %p1544_p13 }
  0x33   : > { %1857 = sst [smem:[#allocation26_spill]] %s1553_s11 }
  0x34   : > { %s218_s18 = sadd.s32 %s911_s28, %s212_s19 }
  0x35   : > { %s874_s24 = sshll.u32 %s218_s18, 6 }
  0x36   : > { %s1563_s21 = scalar_lea.hbm %s1858_s2, %s874_s24  ;;  %s1180_s16 = scalar_lea.hbm %s1858_s2, 4096 }
  0x37   : > { %s1175_s26 = scalar_lea.hbm %s1563_s21, 1024  ;;  %p1181_p4 = scmp.lt.s32.totalorder %s1563_s21, %s1858_s2 }
  0x38   : > { %p1176_p0 = scmp.ne.s32.totalorder %s1563_s21, %s1175_s26  ;;  %p1182_p5 = scmp.lt.s32.totalorder %s1180_s16, %s1175_s26 }
  0x3a   : > { %p1178_p2 = pnand %p1177_p1, %p1176_p0  ;;  %p1183_p6 = por %p1182_p5, %p1181_p4 }
  0x3c   : > { %p1179_p3 = pneg %p1178_p2 }
  0x3e   : > { %p1184_p7 = pnand %p1183_p6, %p1179_p3 }
  0x40   : > { %1187 = shalt.err (!%p1184_p7)
}
  0x41   : > { %s1188_s25 = scalar_lea.vmem %s1538_s15, 1024  ;;  %s1391_s24 = smov [#allocation6]  }
  0x42   : > { %p1189_p9 = scmp.ne.s32.totalorder %s1538_s15, %s1188_s25  ;;  %s1193_s14 = sshll.u32 %s1391_s24, 4  ;;  %s1194_s14 = int_to_ptr.vmem [resolvable:$false] %s1193_s14 }
  0x43   : > { %s1195_s20 = scalar_lea.vmem %s1194_s14, 2048  ;;  %p1196_p2 = scmp.lt.s32.totalorder %s1538_s15, %s1194_s14 }
  0x44   : > { %p1191_p12 = pnand %p1189_p9, %p1177_p1  ;;  %p1197_p11 = scmp.lt.s32.totalorder %s1195_s20, %s1188_s25 }
  0x46   : > { %p1192_p0 = pneg %p1191_p12  ;;  %p1198_p8 = por %p1197_p11, %p1196_p2 }
  0x48   : > { %p1199_p10 = pnand %p1198_p8, %p1192_p0 }
  0x4a   : > { %1202 = shalt.err (!%p1199_p10)
}
  0x4b   : > { %s1839_s26 = smov 128   ;;  %s1393_s17 = smov 64  }
  0x4c   : > { %s1394_s28 = smov 4   ;;  %p71_p8 = scmp.ne.s32.totalorder %s1363_s7, %s1359_s30 }
  0x4d   : > { %1027 = dma.hbm_to_vmem [thread:$0]  (!%p1544_p13), %s1563_s21, 1024, %s1538_s15, %s1566_s4, %s1839_s26, %s1393_s17, %s1394_s28  }
  0x4e   : > { %p1837_p10 = scmp.eq.s32.totalorder %s1558_s27, 0  ;;  %s126_s16 = sadd.s32 1, %s1355_s29 }
  0x4f   : > { %p133_p11 = scmp.ne.s32.totalorder %s1355_s29, %s1351_s1  ;;  %p139_p3 = scmp.ne.s32.totalorder %s1351_s1, %s1347_s0 }
  0x50   : > { %p1598_p1 = por %p1837_p10, %p71_p8  ;;  %p1860_p4 = scmp.eq.s32.totalorder %s1524_s22, 0 }
  0x51   : > { %p1862_p5 = scmp.eq.s32.totalorder %s1387_s13, 0  ;;  %p1613_p13 = por %p139_p3, %p1837_p10 }
  0x52   : > { %s1607_s18 = scalar_select %p1860_p4, %s1355_s29, %s126_s16  }
  0x53   : > { %p135_p6 = por %p133_p11, %p1862_p5  ;;  %p163_p7 = scmp.eq.s32.totalorder %s1558_s27, 3 }
  0x54   : > { %1861 = sst [smem:[#allocation27_spill]] %s1607_s18  ;;  %p169_p9 = scmp.eq.s32.totalorder %s864_s6, 3 }
  0x55   : > { %s1863_s30 = scalar_select %p1613_p13, 1, 0 }
  0x56   : > { %p867_p12 = scmp.ge.s32.totalorder %s1387_s13, 1  ;;  %p176_p0 = scmp.lt.s32.totalorder %s1387_s13, 5 }
  0x57   : > { %p1622_p2 = por %p163_p7, %p133_p11  ;;  %p1626_p8 = por %p169_p9, %p139_p3 }
  0x58   : > { %p1630_p4 = pnand %p867_p12, %p176_p0  ;;  %p1868_p5 = scmp.lt.s32.totalorder %s1387_s13, 4 }
  0x59   : > { %s1864_s15 = scalar_select %p1622_p2, 1, 0 }
  0x5a   : > { %s1865_s22 = scalar_select %p1626_p8, 1, 0 }
  0x5b   : > { %p1636_p10 = pnand %p1868_p5, %p135_p6  ;;  %p1018_p13 = pneg %p1630_p4 }
  0x5c   : > { %1866 = sst [smem:[#allocation28_spill]] %s1865_s22  ;;  %s1395_s6 = smov [#allocation9]  }
  0x5d   : > { %s188_s25 = sshll.u32 %s1395_s6, 4  ;;  %p1870_p11 = scmp.eq.s32.totalorder %s1558_s27, 0  ;;  %s189_s25 = int_to_ptr.vmem [resolvable:$true] %s188_s25 }
  0x5e   : > { %s233_s14 = sand.u32 1, %s1355_s29   ;;  %s876_s16 = sshll.u32 %s1383_s12, 6 }
  0x5f   : > { %p1644_p3 = pnand %p1018_p13, %p1870_p11  ;;  %s875_s20 = sshll.u32 %s233_s14, 3 }
  0x60   : > { %s1214_s26 = scalar_lea.vmem %s189_s25, 2048  ;;  %p1222_p0 = scmp.lt.s32.totalorder %s189_s25, %s189_s25 }
  0x61   : > { %p1205_p7 = pneg %p1644_p3  ;;  %p1215_p6 = scmp.ne.s32.totalorder %s189_s25, %s1214_s26 }
  0x62   : > { %p1223_p5 = scmp.lt.s32.totalorder %s1214_s26, %s1214_s26 }
  0x63   : > { %p1217_p9 = pnand %p1215_p6, %p1205_p7 }
  0x64   : > { %p1224_p8 = por %p1223_p5, %p1222_p0 }
  0x65   : > { %p1218_p12 = pneg %p1217_p9 }
  0x67   : > { %p1225_p2 = pnand %p1224_p8, %p1218_p12 }
  0x69   : > { %1228 = shalt.err (!%p1225_p2)
}
  0x6a   : > { %1021 = dma.hbm_to_vmem [thread:$0]  (!%p1644_p3), %s1826_s3, 2048, %s189_s25, [#allocation10], %s1393_s17, %s1393_s17, %s1394_s28  }
  0x6b   : > { %s240_s11 = scalar_lea.hbm %s1828_s5, %s876_s16  ;;  %s235_s8 = scalar_lea.vmem [#allocation11], %s875_s20 }
  0x6c   : > { %s241_s18 = sshll.u32 %s235_s8, 4  ;;  %p1231_p13 = pneg %p1636_p10  ;;  %s242_s18 = int_to_ptr.vmem [resolvable:$true] %s241_s18 }
  0x6d   : > { %s1242_s26 = scalar_lea.vmem %s242_s18, 128  ;;  %s1396_s24 = smov [#allocation11]  }
  0x6e   : > { %p1243_p2 = scmp.ne.s32.totalorder %s242_s18, %s1242_s26  ;;  %s1247_s29 = sshll.u32 %s1396_s24, 4  ;;  %s1248_s29 = int_to_ptr.vmem [resolvable:$false] %s1247_s29 }
  0x6f   : > { %s1249_s22 = scalar_lea.vmem %s1248_s29, 256  ;;  %p1250_p7 = scmp.lt.s32.totalorder %s242_s18, %s1248_s29 }
  0x70   : > { %p1245_p8 = pnand %p1243_p2, %p1231_p13  ;;  %p1251_p6 = scmp.lt.s32.totalorder %s1249_s22, %s1242_s26 }
  0x72   : > { %p1246_p11 = pneg %p1245_p8  ;;  %p1252_p3 = por %p1251_p6, %p1250_p7 }
  0x74   : > { %p1253_p9 = pnand %p1252_p3, %p1246_p11 }
  0x76   : > { %1256 = shalt.err (!%p1253_p9)
}
  0x77   : > { %s1872_s2 = smov 128   ;;  %253 = sbr.rel (%p1630_p4) target bundleno = 681 (0x2a9), region = 36 }
  0x78   : > { %1030 = dma.hbm_to_vmem [thread:$0]  (!%p1636_p10), %s240_s11, 128, %s242_s18, %s1566_s4, %s1872_s2, %s1393_s17, %s1394_s28  }
  0x79   : > { %s255_s8 = sand.u32 (!%p1630_p4), 1, %s1558_s27   ;;  %s257_s12 = sand.u32 (!%p1630_p4), 1, %s1363_s7  }
  0x7a   : > { %s878_s29 = sshll.u32 (!%p1630_p4), %s257_s12, 6  ;;  %s256_s22 = scalar_lea.sflag (!%p1630_p4), [#allocation7], %s255_s8 }
  0x7b   : > { %s1675_s25 = scalar_lea.vmem (!%p1630_p4), [#allocation6], %s878_s29 }
  0x7c   : > { %1330 = dma.done.wait (%p1598_p1), %s256_s22, 1024  }
  0x7d   : > { %1332 = vsyncadd (%p1598_p1), %s256_s22, 4294966272  ;;  %p1873_p12 = scmp.eq.s32.totalorder %s1558_s27, 0 }
  0x7f   : > { %1334 = dma.done.wait (%p1873_p12), [#allocation10], 2048   ;;  %p1874_p10 = pmov %p1873_p12 }
  0x80   : > { %s1686_s4 = sand.u32 1, %s1351_s1   ;;  %p1875_p4 = scmp.ne.s32.totalorder %s1863_s30, 0 }
  0x81   : > { %1336 = vsyncadd (%p1874_p10), [#allocation10], 4294965248  ;;  %s880_s11 = sshll.u32 %s1686_s4, 3 }
  0x82   : > { %s1689_s17 = scalar_lea.vmem [#allocation11], %s880_s11 }
  0x83   : > { %1338 = dma.done.wait (%p1875_p4), %s256_s22, 128  }
  0x84   : > { %1340 = vsyncadd (%p1875_p4), %s256_s22, 4294967168  ;;  %s881_s28 = sshll.u32 %s1686_s4, 4  ;;  %p882_p1 = scmp.ne.s32.totalorder %s1371_s9, 0 }
  0x85   : > { %s1696_s19 = scalar_lea.vmem [#allocation12], %s881_s28 }
  0x86   : > { %310 = sbr.rel (%p882_p1) target bundleno = 148 (0x94), region = 52 }
  0x8b   : > { %v1397_v0 = vmov 0.0  }
  0x8c   : > { %311 = vst [vmem:[#allocation2 + $0x30] sm:$0xff] %v1397_v0  ;;  %312 = vst [vmem:[#allocation2] sm:$0xff] %v1397_v0 }
  0x8d   : > { %313 = vst [vmem:[#allocation2 + $0x58] sm:$0xff] %v1397_v0  ;;  %314 = vst [vmem:[#allocation2 + $0x18] sm:$0xff] %v1397_v0 }
  0x8e   : > { %315 = vst [vmem:[#allocation2 + $0x50] sm:$0xff] %v1397_v0  ;;  %316 = vst [vmem:[#allocation2 + $0x68] sm:$0xff] %v1397_v0 }
  0x8f   : > { %317 = vst [vmem:[#allocation2 + $0x8] sm:$0xff] %v1397_v0  ;;  %318 = vst [vmem:[#allocation2 + $0x48] sm:$0xff] %v1397_v0 }
  0x90   : > { %319 = vst [vmem:[#allocation2 + $0x40] sm:$0xff] %v1397_v0  ;;  %320 = vst [vmem:[#allocation2 + $0x20] sm:$0xff] %v1397_v0 }
  0x91   : > { %321 = vst [vmem:[#allocation2 + $0x10] sm:$0xff] %v1397_v0  ;;  %322 = vst [vmem:[#allocation2 + $0x38] sm:$0xff] %v1397_v0 }
  0x92   : > { %323 = vst [vmem:[#allocation2 + $0x60] sm:$0xff] %v1397_v0  ;;  %324 = vst [vmem:[#allocation2 + $0x70] sm:$0xff] %v1397_v0 }
  0x93   : > { %325 = vst [vmem:[#allocation2 + $0x78] sm:$0xff] %v1397_v0  ;;  %326 = vst [vmem:[#allocation2 + $0x28] sm:$0xff] %v1397_v0 }
  0x94 PF: > { %s327_s27 = sld [smem:[#allocation5 + %s1375_s10]] }
  0x9a   : > { %p883_p0 = scmp.ge.s32.totalorder %s1371_s9, %s327_s27 }
  0x9b   : > { %s884_s18 = sshll.u32 (!%p883_p0), %s1375_s10, 1 }
  0x9c   : > { %331 = sbr.rel (%p883_p0) target bundleno = 410 (0x19a), region = 56  ;;  %s333_s30 = sadd.s32 (!%p883_p0), %s1371_s9, %s884_s18 }
  0x9d   : > { %s334_s23 = sld [smem:[#allocation4 + %s333_s30]] (!%p883_p0) }
  0xa1   : > { %v1146_v1 = vld [vmem:[%s1675_s25] sm:$0xff]   ;;  %v1148_v11 = vld [vmem:[%s1675_s25 + $0x8] sm:$0xff]   ;;  %v1150_v13 = vld [vmem:[%s1675_s25 + $0x10] sm:$0xff]  }
  0xa2   : > { %v1147_v2 = vld [vmem:[%s1675_s25 + $0x20] sm:$0xff]   ;;  %954 = vmatprep.mubr.bf16.mxu0 %v1146_v1  ;;  %v1149_v12 = vld [vmem:[%s1675_s25 + $0x28] sm:$0xff]   ;;  %v1151_v14 = vld [vmem:[%s1675_s25 + $0x30] sm:$0xff]  }
  0xa3   : > { %962 = vmatprep.mubr.bf16.mxu1 %v1147_v2  ;;  %s885_s21 = sshll.u32 %s334_s23, 7  ;;  %v1152_v15 = vld [vmem:[%s1675_s25 + $0x18] sm:$0xff]   ;;  %v366_v18 = vld [vmem:[#allocation2 + $0x10] sm:$0xff]  ;;  %v364_v22 = vld [vmem:[#allocation2 + $0x40] sm:$0xff] }
  0xa4   : > { %s336_s20 = sshra.s32 %s885_s21, 3  ;;  %v1153_v16 = vld [vmem:[%s1675_s25 + $0x38] sm:$0xff]   ;;  %v356_v21 = vld [vmem:[#allocation2 + $0x30] sm:$0xff]  ;;  %v357_v33 = vld [vmem:[#allocation2] sm:$0xff] }
  0xa5   : > { %s886_s16 = sshll.u32 %s336_s20, 2  ;;  %v358_v17 = vld [vmem:[#allocation2 + $0x58] sm:$0xff]  ;;  %v365_v34 = vld [vmem:[#allocation2 + $0x20] sm:$0xff]  ;;  %v362_v39 = vld [vmem:[#allocation2 + $0x8] sm:$0xff] }
  0xa6   : > { %s1705_s6 = scalar_lea.vmem [#allocation9], %s886_s16  ;;  %v359_v27 = vld [vmem:[#allocation2 + $0x18] sm:$0xff]  ;;  %v360_v45 = vld [vmem:[#allocation2 + $0x50] sm:$0xff]  ;;  %v368_v46 = vld [vmem:[#allocation2 + $0x60] sm:$0xff] }
  0xa7   : > { %v1138_v3 = vld [vmem:[%s1705_s6 + $0x38] sm:$0xff]   ;;  %v1139_v4 = vld [vmem:[%s1705_s6 + $0x30] sm:$0xff]   ;;  %v1140_v5 = vld [vmem:[%s1705_s6 + $0x28] sm:$0xff]  }
  0xa8   : > { %938 = vmatprep.subr.bf16.mxu0 %v1138_v3  ;;  %990 = vmatprep.subr.bf16.mxu1 %v1138_v3  ;;  %v1141_v6 = vld [vmem:[%s1705_s6 + $0x20] sm:$0xff]   ;;  %v1142_v7 = vld [vmem:[%s1705_s6 + $0x18] sm:$0xff]   ;;  %v1143_v8 = vld [vmem:[%s1705_s6 + $0x10] sm:$0xff]  }
  0xa9   : > { %939 = vmatpush3.bf16.msra.mxu0 %v1138_v3  ;;  %998 = vmatpush3.bf16.msra.mxu1 %v1138_v3  ;;  %v1144_v9 = vld [vmem:[%s1705_s6 + $0x8] sm:$0xff]   ;;  %v1145_v10 = vld [vmem:[%s1705_s6] sm:$0xff]   ;;  %v367_v28 = vld [vmem:[#allocation2 + $0x38] sm:$0xff] }
  0xaa   : > { %940 = vmatprep.subr.bf16.mxu0 %v1139_v4  ;;  %991 = vmatprep.subr.bf16.mxu1 %v1139_v4  ;;  %v370_v40 = vld [vmem:[#allocation2 + $0x78] sm:$0xff]  ;;  %v363_v51 = vld [vmem:[#allocation2 + $0x48] sm:$0xff]  ;;  %v369_v58 = vld [vmem:[#allocation2 + $0x70] sm:$0xff] }
  0xab   : > { %v371_v52 = vld [vmem:[#allocation2 + $0x28] sm:$0xff] }
  0xac   : > { %v361_v57 = vld [vmem:[#allocation2 + $0x68] sm:$0xff] }
  0xad   : > { %941 = vmatpush3.bf16.msra.mxu0 %v1139_v4  ;;  %999 = vmatpush3.bf16.msra.mxu1 %v1139_v4 }
  0xae   : > { %942 = vmatprep.subr.bf16.mxu0 %v1140_v5  ;;  %992 = vmatprep.subr.bf16.mxu1 %v1140_v5 }
  0xb1   : > { %943 = vmatpush3.bf16.msra.mxu0 %v1140_v5  ;;  %1000 = vmatpush3.bf16.msra.mxu1 %v1140_v5 }
  0xb2   : > { %944 = vmatprep.subr.bf16.mxu0 %v1141_v6  ;;  %993 = vmatprep.subr.bf16.mxu1 %v1141_v6 }
  0xb5   : > { %945 = vmatpush3.bf16.msra.mxu0 %v1141_v6  ;;  %1001 = vmatpush3.bf16.msra.mxu1 %v1141_v6 }
  0xb6   : > { %946 = vmatprep.subr.bf16.mxu0 %v1142_v7  ;;  %994 = vmatprep.subr.bf16.mxu1 %v1142_v7 }
  0xb9   : > { %947 = vmatpush3.bf16.msra.mxu0 %v1142_v7  ;;  %1002 = vmatpush3.bf16.msra.mxu1 %v1142_v7 }
  0xba   : > { %948 = vmatprep.subr.bf16.mxu0 %v1143_v8  ;;  %995 = vmatprep.subr.bf16.mxu1 %v1143_v8 }
  0xbd   : > { %949 = vmatpush3.bf16.msra.mxu0 %v1143_v8  ;;  %1003 = vmatpush3.bf16.msra.mxu1 %v1143_v8 }
  0xbe   : > { %950 = vmatprep.subr.bf16.mxu0 %v1144_v9  ;;  %996 = vmatprep.subr.bf16.mxu1 %v1144_v9 }
  0xc1   : > { %951 = vmatpush3.bf16.msra.mxu0 %v1144_v9  ;;  %1004 = vmatpush3.bf16.msra.mxu1 %v1144_v9 }
  0xc2   : > { %952 = vmatprep.subr.bf16.mxu0 %v1145_v10  ;;  %997 = vmatprep.subr.bf16.mxu1 %v1145_v10 }
  0xc5   : > { %953 = vmatpush3.bf16.msra.mxu0 %v1145_v10  ;;  %1005 = vmatpush3.bf16.msra.mxu1 %v1145_v10 }
  0xc8   : > { %955 = vmatmul.mubr.bf16.vlgmr.msra.gmra.mxu0 %v1148_v11  ;;  %963 = vmatmul.mubr.bf16.vlgmr.msra.gmra.mxu1 %v1149_v12 }
  0xc9   : > { %958 = vmatprep.mubr.bf16.mxu0 %v1150_v13  ;;  %966 = vmatprep.mubr.bf16.mxu1 %v1151_v14 }
  0xd0   : > { %959 = vmatmul.mubr.bf16.gmra.mxu0 %v1152_v15  ;;  %967 = vmatmul.mubr.bf16.gmra.mxu1 %v1153_v16 }
 0x188   : > { %v956_v19 = vpop.f32.mrf.mxu0  ;;  %v964_v20 = vpop.f32.mrf.mxu1 }
 0x189   : > { %v583_v23 = vadd.f32 %v956_v19, %v358_v17  ;;  %v591_v24 = vadd.f32 %v964_v20, %v366_v18 }
 0x18a   : > { %v518_v25 = vpop.f32.mrf.mxu0  ;;  %v550_v26 = vpop.f32.mrf.mxu1 }
 0x18b   : > { %599 = vst [vmem:[#allocation2 + $0x58] sm:$0xff] %v583_v23  ;;  %607 = vst [vmem:[#allocation2 + $0x10] sm:$0xff] %v591_v24  ;;  %v581_v29 = vadd.f32 %v518_v25, %v356_v21  ;;  %v589_v30 = vadd.f32 %v550_v26, %v364_v22 }
 0x18c   : > { %v957_v31 = vpop.f32.mrf.mxu0  ;;  %v965_v32 = vpop.f32.mrf.mxu1 }
 0x18d   : > { %597 = vst [vmem:[#allocation2 + $0x30] sm:$0xff] %v581_v29  ;;  %605 = vst [vmem:[#allocation2 + $0x40] sm:$0xff] %v589_v30  ;;  %v584_v35 = vadd.f32 %v957_v31, %v359_v27  ;;  %v592_v36 = vadd.f32 %v965_v32, %v367_v28 }
 0x18e   : > { %v521_v37 = vpop.f32.mrf.mxu0  ;;  %v553_v38 = vpop.f32.mrf.mxu1 }
 0x18f   : > { %600 = vst [vmem:[#allocation2 + $0x18] sm:$0xff] %v584_v35  ;;  %608 = vst [vmem:[#allocation2 + $0x38] sm:$0xff] %v592_v36  ;;  %v582_v41 = vadd.f32 %v521_v37, %v357_v33  ;;  %v590_v42 = vadd.f32 %v553_v38, %v365_v34 }
 0x190   : > { %v960_v43 = vpop.f32.mrf.mxu0  ;;  %v968_v44 = vpop.f32.mrf.mxu1 }
 0x191   : > { %598 = vst [vmem:[#allocation2] sm:$0xff] %v582_v41  ;;  %606 = vst [vmem:[#allocation2 + $0x20] sm:$0xff] %v590_v42  ;;  %v587_v47 = vadd.f32 %v960_v43, %v362_v39  ;;  %v595_v48 = vadd.f32 %v968_v44, %v370_v40 }
 0x192   : > { %v534_v49 = vpop.f32.mrf.mxu0  ;;  %v566_v50 = vpop.f32.mrf.mxu1 }
 0x193   : > { %603 = vst [vmem:[#allocation2 + $0x8] sm:$0xff] %v587_v47  ;;  %611 = vst [vmem:[#allocation2 + $0x78] sm:$0xff] %v595_v48  ;;  %v585_v53 = vadd.f32 %v534_v49, %v360_v45  ;;  %v593_v54 = vadd.f32 %v566_v50, %v368_v46 }
 0x194   : > { %v961_v55 = vpop.f32.mrf.mxu0  ;;  %v969_v56 = vpop.f32.mrf.mxu1 }
 0x195   : > { %601 = vst [vmem:[#allocation2 + $0x50] sm:$0xff] %v585_v53  ;;  %609 = vst [vmem:[#allocation2 + $0x60] sm:$0xff] %v593_v54  ;;  %v588_v59 = vadd.f32 %v961_v55, %v363_v51  ;;  %v596_v60 = vadd.f32 %v969_v56, %v371_v52 }
 0x196   : > { %v537_v61 = vpop.f32.mrf.mxu0  ;;  %v569_v62 = vpop.f32.mrf.mxu1 }
 0x197   : > { %604 = vst [vmem:[#allocation2 + $0x48] sm:$0xff] %v588_v59  ;;  %612 = vst [vmem:[#allocation2 + $0x28] sm:$0xff] %v596_v60  ;;  %v586_v63 = vadd.f32 %v537_v61, %v361_v57  ;;  %v594_v0 = vadd.f32 %v569_v62, %v369_v58 }
 0x199   : > { %602 = vst [vmem:[#allocation2 + $0x68] sm:$0xff] %v586_v63  ;;  %610 = vst [vmem:[#allocation2 + $0x70] sm:$0xff] %v594_v0 }
 0x19a PF: > { %p903_p5 = scmp.ne.s32.totalorder %s1371_s9, 1 }
 0x19b   : > { %s1876_s24 = sld [smem:[#allocation30_spill]] (!%p903_p5) }
 0x19c   : > { %616 = sbr.rel (%p903_p5) target bundleno = 654 (0x28e), region = 60 }
 0x1a1   : > { %v631_v1 = vld [vmem:[#allocation2 + $0x78] sm:$0xff]  ;;  %v632_v2 = vld [vmem:[#allocation2 + $0x28] sm:$0xff]  ;;  %v1725_v3 = vld [vmem:[%s1876_s24] ss:$0 sm:$0xff]  ;;  %v1398_v4 = vmov 0.0   ;;  %vm1399_vm0 = vmmov 0  }
 0x1a2   : > { %970 = vmatprep.subr.bf16.mxu0 %v1398_v4  ;;  %v654_v5 = vadd.f32 %v1725_v3, %v631_v1  ;;  %v655_v6 = vadd.f32 %v1725_v3, %v632_v2  ;;  %v629_v7 = vld [vmem:[#allocation2 + $0x60] sm:$0xff]  ;;  %v630_v8 = vld [vmem:[#allocation2 + $0x70] sm:$0xff]  ;;  %986 = vmatprep.mubr.msk.bf16.mxu0 %vm1399_vm0, %v1398_v4  ;;  %v628_v12 = vld [vmem:[#allocation2 + $0x38] sm:$0xff] }
 0x1a3   : > { %v627_v9 = vld [vmem:[#allocation2 + $0x10] sm:$0xff]  ;;  %v652_v10 = vadd.f32 %v1725_v3, %v629_v7  ;;  %v653_v11 = vadd.f32 %v1725_v3, %v630_v8  ;;  %v651_v16 = vadd.f32 %v1725_v3, %v628_v12  ;;  %v625_v17 = vld [vmem:[#allocation2 + $0x40] sm:$0xff]  ;;  %v623_v27 = vld [vmem:[#allocation2 + $0x8] sm:$0xff] }
 0x1a4   : > { %v670_v13 = vmax.f32 %v654_v5, 0.0  ;;  %v671_v14 = vmax.f32 %v655_v6, 0.0  ;;  %v650_v15 = vadd.f32 %v1725_v3, %v627_v9  ;;  %v626_v20 = vld [vmem:[#allocation2 + $0x20] sm:$0xff]  ;;  %v648_v22 = vadd.f32 %v1725_v3, %v625_v17  ;;  %v624_v28 = vld [vmem:[#allocation2 + $0x48] sm:$0xff]  ;;  %v621_v34 = vld [vmem:[#allocation2 + $0x50] sm:$0xff] }
 0x1a5   : > { %v668_v18 = vmax.f32 %v652_v10, 0.0  ;;  %v669_v19 = vmax.f32 %v653_v11, 0.0  ;;  %v667_v25 = vmax.f32 %v651_v16, 0.0  ;;  %v649_v26 = vadd.f32 %v1725_v3, %v626_v20  ;;  %v622_v35 = vld [vmem:[#allocation2 + $0x68] sm:$0xff]  ;;  %v619_v41 = vld [vmem:[#allocation2 + $0x58] sm:$0xff]  ;;  %v617_v48 = vld [vmem:[#allocation2 + $0x30] sm:$0xff] }
 0x1a6   : > { %v679_v21 = vpack.c.bf16 %v671_v14, %v670_v13  ;;  %v666_v24 = vmax.f32 %v650_v15, 0.0  ;;  %v664_v29 = vmax.f32 %v648_v22, 0.0  ;;  %v646_v32 = vadd.f32 %v1725_v3, %v623_v27  ;;  %v620_v42 = vld [vmem:[#allocation2 + $0x18] sm:$0xff]  ;;  %v618_v49 = vld [vmem:[#allocation2] sm:$0xff] }
 0x1a7   : > { %v678_v23 = vpack.c.bf16 %v669_v19, %v668_v18  ;;  %v665_v31 = vmax.f32 %v649_v26, 0.0  ;;  %v647_v33 = vadd.f32 %v1725_v3, %v624_v28  ;;  %v644_v36 = vadd.f32 %v1725_v3, %v621_v34  ;;  %v1154_v59 = vld [vmem:[%s1689_s17] sm:$0xff]  }
 0x1a8   : > { %971 = vmatpush3.bf16.msra.mxu0 %v679_v21  ;;  %v677_v30 = vpack.c.bf16 %v667_v25, %v666_v24  ;;  %v662_v38 = vmax.f32 %v646_v32, 0.0  ;;  %v645_v40 = vadd.f32 %v1725_v3, %v622_v35  ;;  %v642_v43 = vadd.f32 %v1725_v3, %v619_v41 }
 0x1a9   : > { %972 = vmatprep.subr.bf16.mxu0 %v1398_v4  ;;  %v676_v37 = vpack.c.bf16 %v665_v31, %v664_v29  ;;  %v663_v39 = vmax.f32 %v647_v33, 0.0  ;;  %v660_v45 = vmax.f32 %v644_v36, 0.0  ;;  %v643_v47 = vadd.f32 %v1725_v3, %v620_v42 }
 0x1aa   : > { %v661_v46 = vmax.f32 %v645_v40, 0.0  ;;  %v658_v50 = vmax.f32 %v642_v43, 0.0  ;;  %v640_v53 = vadd.f32 %v1725_v3, %v617_v48  ;;  %v641_v54 = vadd.f32 %v1725_v3, %v618_v49 }
 0x1ab   : > { %v675_v44 = vpack.c.bf16 %v663_v39, %v662_v38  ;;  %v659_v52 = vmax.f32 %v643_v47, 0.0 }
 0x1ac   : > { %973 = vmatpush3.bf16.msra.mxu0 %v678_v23  ;;  %v674_v51 = vpack.c.bf16 %v661_v46, %v660_v45  ;;  %v656_v56 = vmax.f32 %v640_v53, 0.0  ;;  %v657_v57 = vmax.f32 %v641_v54, 0.0 }
 0x1ad   : > { %974 = vmatprep.subr.bf16.mxu0 %v1398_v4  ;;  %v673_v55 = vpack.c.bf16 %v659_v52, %v658_v50 }
 0x1ae   : > { %v672_v58 = vpack.c.bf16 %v657_v57, %v656_v56 }
 0x1b0   : > { %975 = vmatpush3.bf16.msra.mxu0 %v677_v30 }
 0x1b1   : > { %976 = vmatprep.subr.bf16.mxu0 %v1398_v4 }
 0x1b4   : > { %977 = vmatpush3.bf16.msra.mxu0 %v676_v37 }
 0x1b5   : > { %978 = vmatprep.subr.bf16.mxu0 %v1398_v4 }
 0x1b8   : > { %979 = vmatpush3.bf16.msra.mxu0 %v675_v44 }
 0x1b9   : > { %980 = vmatprep.subr.bf16.mxu0 %v1398_v4 }
 0x1bc   : > { %981 = vmatpush3.bf16.msra.mxu0 %v674_v51 }
 0x1bd   : > { %982 = vmatprep.subr.bf16.mxu0 %v1398_v4 }
 0x1c0   : > { %983 = vmatpush3.bf16.msra.mxu0 %v673_v55 }
 0x1c1   : > { %984 = vmatprep.subr.bf16.mxu0 %v1398_v4 }
 0x1c4   : > { %985 = vmatpush3.bf16.msra.mxu0 %v672_v58 }
 0x1c7   : > { %987 = vmatmul.mubr.bf16.vlgmr.msra.gmra.mxu0 %v1154_v59 }
 0x287   : > { %v722_v60 = vpop.f32.mrf.mxu0 }
 0x288   : > { %729 = vst [vmem:[%s1696_s19] sm:$0xff] %v722_v60 }
 0x289   : > { %v988_v61 = vpop.f32.mrf.mxu0 }
 0x28b   : > { %v725_v62 = vpop.f32.mrf.mxu0 }
 0x28c   : > { %730 = vst [vmem:[%s1696_s19 + $0x8] sm:$0xff] %v725_v62 }
 0x28d   : > { %v989_v63 = vpop.f32.mrf.mxu0 }
 0x28e PF: > { %s912_s9 = sshll.u32 %s1375_s10, 8  ;;  %s1877_s12 = sld [smem:[#allocation31_spill]] }
 0x28f   : > { %s745_s25 = sshll.u32 %s1696_s19, 4  ;;  %s732_s11 = scalar_lea.sflag [#allocation8], %s1686_s4  ;;  %s1762_s25 = int_to_ptr.vmem [resolvable:$true] %s745_s25 }
 0x290   : > { %s1257_s17 = scalar_lea.vmem %s1762_s25, 256  ;;  %p1879_p2 = scmp.ne.s32.totalorder %s1864_s15, 0 }
 0x291   : > { %p1258_p13 = scmp.ne.s32.totalorder %s1762_s25, %s1257_s17  ;;  %s1400_s28 = smov [#allocation12]  }
 0x292   : > { %s1261_s27 = sshll.u32 %s1400_s28, 4  ;;  %s1262_s27 = int_to_ptr.vmem [resolvable:$false] %s1261_s27 }
 0x293   : > { %p1259_p8 = pnand %p1258_p13, %p1879_p2  ;;  %s1263_s10 = scalar_lea.vmem %s1262_s27, 512 }
 0x294   : > { %s1878_s22 = smov %s1877_s12  ;;  %s1759_s29 = scalar_lea.hbm %s1877_s12, %s912_s9 }
 0x295   : > { %p1260_p11 = pneg %p1259_p8  ;;  %p1264_p7 = scmp.lt.s32.totalorder %s1762_s25, %s1262_s27 }
 0x296   : > { %p1265_p6 = scmp.lt.s32.totalorder %s1263_s10, %s1257_s17 }
 0x298   : > { %p1266_p3 = por %p1265_p6, %p1264_p7 }
 0x29a   : > { %p1267_p9 = pnand %p1266_p3, %p1260_p11 }
 0x29c   : > { %1270 = shalt.err (!%p1267_p9)
}
 0x29d   : > { %s1271_s19 = scalar_lea.hbm %s1759_s29, 256  ;;  %s1275_s23 = scalar_lea.hbm %s1878_s22, 512 }
 0x29e   : > { %p1272_p12 = scmp.ne.s32.totalorder %s1759_s29, %s1271_s19  ;;  %p1276_p1 = scmp.lt.s32.totalorder %s1759_s29, %s1878_s22 }
 0x29f   : > { %p1277_p0 = scmp.lt.s32.totalorder %s1275_s23, %s1271_s19 }
 0x2a0   : > { %p1273_p10 = pnand %p1272_p12, %p1879_p2 }
 0x2a1   : > { %p1278_p5 = por %p1277_p0, %p1276_p1 }
 0x2a2   : > { %p1274_p4 = pneg %p1273_p10 }
 0x2a4   : > { %p1279_p13 = pnand %p1278_p5, %p1274_p4 }
 0x2a6   : > { %1282 = shalt.err (!%p1279_p13)
}
 0x2a7   : > { %s1401_s16 = smov 128   ;;  %s1402_s6 = smov 8  }
 0x2a8   : > { %1016 = dma.vmem_to_hbm [thread:$0]  (%p1879_p2), %s1762_s25, 256, %s1759_s29, %s732_s11, %s1401_s16, %s1401_s16, %s1402_s6  }
 0x2a9 PF: > { %s1880_s14 = sld [smem:[#allocation28_spill]]  ;;  %p1038_p8 = scmp.ge.s32.totalorder %s1387_s13, 2 }
 0x2aa   : > { %s760_s26 = sand.u32 1, %s1347_s0  }
 0x2ab   : > { %s761_s24 = scalar_lea.sflag [#allocation8], %s760_s26 }
 0x2af   : > { %p1881_p11 = scmp.ne.s32.totalorder %s1880_s14, 0 }
 0x2b1   : > { %p1032_p7 = pnand %p1038_p8, %p1881_p11 }
 0x2b3   : > { %p1033_p6 = pneg %p1032_p7 }
 0x2b5   : > { %1342 = dma.done.wait (%p1033_p6), %s761_s24, 256  }
 0x2b6   : > { %1344 = vsyncadd (%p1033_p6), %s761_s24, 4294967040  ;;  %s31_s13 = sadd.s32 1, %s1387_s13   ;;  %s1882_s9 = sld [smem:[#allocation20_spill]] }
 0x2b7   : > { %p28_p3 = scmp.ge.s32.totalorder %s31_s13, 6   ;;  %s1883_s29 = sld [smem:[#allocation27_spill]] }
 0x2b8   : > { %s1884_s15 = sld [smem:[#allocation21_spill]]  ;;  %s1890_s0 = smov %s1351_s1 }
 0x2b9   : > { %s1885_s8 = sld [smem:[#allocation26_spill]]  ;;  %s1892_s30 = smov %s1363_s7 }
 0x2ba   : > { %s1886_s4 = sld [smem:[#allocation22_spill]] }
 0x2bb   : > { %s1887_s10 = sld [smem:[#allocation23_spill]] }
 0x2bc   : > { %s1888_s11 = sld [smem:[#allocation24_spill]]  ;;  %s1891_s1 = smov %s1882_s9 }
 0x2bd   : > { %s1889_s12 = sld [smem:[#allocation25_spill]]  ;;  %30 = sbr.rel (!%p28_p3) target bundleno = 27 (0x1b), region = 109 }
 0x2be   : > { %s1893_s7 = smov %s1884_s15 }
 0x2c0   : > { %s1894_s9 = smov %s1886_s4 }
 0x2c2   :  { %766 = vsyncpa [#allocation7], 1 }
 0x2c3   :  { %768 = vsyncpa [#allocation7 + $0x1], 1 }
 0x2c4   :  { %769 = vsyncpa [#allocation10], 1 }
 0x2c5   :  { %770 = vsyncpa [#allocation8], 1 }
 0x2c6   :  { %772 = vsyncpa [#allocation8 + $0x1], 1 }

</bundles_post_ra>
